<compile_context>
chip_gen: v7x
topology: tpu7x:2x2x1
jax: 0.10.0
libtpu: 0.0.40
codegen_flags: <defaults>
</compile_context>

<pallas_src>
import functools
import math

import jax
import jax.numpy as jnp
from jax.experimental import pallas as pl
from jax.experimental.pallas import tpu as pltpu


# Tile caps.  Defaults are sized against the ~32 MiB scoped-VMEM default so the same
# kernels port across v5e/v6e/v7x; __main__ shrinks them only to exercise the
# multi-block grid paths at toy sizes.
TILES = {
    "linear_tm": 512,     # row tile of the generic linear kernel
    "node_tm": 256,       # row tile of the fused node-transition kernel
    "edge_tm": 512,       # row tile of the fused edge-transition trunk kernel
    "attn_tq_cap": 128,   # max query tile for the IPA attention kernel
}

_LN_EPS = 1e-5
_INF = 1e5


def _row_tile(M, cap):
    if M <= cap:
        return M
    return max(8, (cap // 8) * 8)


def _ln(x, g, b, eps=_LN_EPS):
    mu = jnp.mean(x, axis=-1, keepdims=True)
    var = jnp.mean((x - mu) ** 2, axis=-1, keepdims=True)
    return (x - mu) * jax.lax.rsqrt(var + eps) * g + b


# ----------------------------------------------------------------------------
# Generic row-tiled linear kernel: y = x @ w + b (optionally fused ReLU)
# ----------------------------------------------------------------------------
@functools.lru_cache(maxsize=None)
def _linear_call(M, K, N_out, activation, TM):
    def kernel(x_ref, w_ref, b_ref, o_ref):
        y = jnp.dot(x_ref[...], w_ref[...], preferred_element_type=jnp.float32)
        y = y + b_ref[...]
        if activation == "relu":
            y = jnp.maximum(y, 0.0)
        o_ref[...] = y.astype(o_ref.dtype)

    return pl.pallas_call(
        kernel,
        out_shape=jax.ShapeDtypeStruct((M, N_out), jnp.float32),
        grid=(pl.cdiv(M, TM),),
        in_specs=[
            pl.BlockSpec((TM, K), lambda i: (i, 0)),
            pl.BlockSpec((K, N_out), lambda i: (0, 0)),
            pl.BlockSpec((1, N_out), lambda i: (0, 0)),
        ],
        out_specs=pl.BlockSpec((TM, N_out), lambda i: (i, 0)),
        compiler_params=pltpu.CompilerParams(dimension_semantics=("parallel",)),
    )


def pallas_linear(x, w, b, activation=None):
    K, N_out = w.shape
    lead = x.shape[:-1]
    x2 = x.reshape(-1, K)
    M = x2.shape[0]
    TM = _row_tile(M, TILES["linear_tm"])
    out = _linear_call(M, K, N_out, activation, TM)(x2, w, b.reshape(1, N_out))
    return out.reshape(lead + (N_out,))


# ----------------------------------------------------------------------------
# Fused node-path epilogue: residual + LN + pre-linear + StructureModuleTransition
# (Linear/ReLU x2, Linear, residual, LN) + post-linear, tiled over rows.
# ----------------------------------------------------------------------------
@functools.lru_cache(maxsize=None)
def _node_block_call(M, D, Hd, TM):
    def kernel(s_ref, d_ref, g1_ref, b1_ref, pw_ref, pb_ref,
               w1_ref, c1_ref, w2_ref, c2_ref, w3_ref, c3_ref,
               g2_ref, b2_ref, ow_ref, ob_ref, o_ref):
        x = s_ref[...] + d_ref[...]                       # s + IPA output
        x = _ln(x, g1_ref[...], b1_ref[...])
        x = jnp.dot(x, pw_ref[...], preferred_element_type=jnp.float32) + pb_ref[...]
        x0 = x
        x = jnp.maximum(jnp.dot(x, w1_ref[...], preferred_element_type=jnp.float32)
                        + c1_ref[...], 0.0)
        x = jnp.maximum(jnp.dot(x, w2_ref[...], preferred_element_type=jnp.float32)
                        + c2_ref[...], 0.0)
        x = jnp.dot(x, w3_ref[...], preferred_element_type=jnp.float32) + c3_ref[...]
        x = _ln(x + x0, g2_ref[...], b2_ref[...])
        o_ref[...] = (jnp.dot(x, ow_ref[...], preferred_element_type=jnp.float32)
                      + ob_ref[...]).astype(o_ref.dtype)

    row = lambda i: (i, 0)
    full = lambda i: (0, 0)
    return pl.pallas_call(
        kernel,
        out_shape=jax.ShapeDtypeStruct((M, D), jnp.float32),
        grid=(pl.cdiv(M, TM),),
        in_specs=[
            pl.BlockSpec((TM, D), row), pl.BlockSpec((TM, D), row),
            pl.BlockSpec((1, D), full), pl.BlockSpec((1, D), full),
            pl.BlockSpec((D, Hd), full), pl.BlockSpec((1, Hd), full),
            pl.BlockSpec((Hd, Hd), full), pl.BlockSpec((1, Hd), full),
            pl.BlockSpec((Hd, Hd), full), pl.BlockSpec((1, Hd), full),
            pl.BlockSpec((Hd, Hd), full), pl.BlockSpec((1, Hd), full),
            pl.BlockSpec((1, Hd), full), pl.BlockSpec((1, Hd), full),
            pl.BlockSpec((Hd, D), full), pl.BlockSpec((1, D), full),
        ],
        out_specs=pl.BlockSpec((TM, D), row),
        compiler_params=pltpu.CompilerParams(dimension_semantics=("parallel",)),
    )


# ----------------------------------------------------------------------------
# Fused EdgeTransition trunk: (Linear+ReLU) x2, residual, final Linear, LayerNorm
# ----------------------------------------------------------------------------
@functools.lru_cache(maxsize=None)
def _edge_trunk_call(M, Hd, Dz, TM):
    def kernel(e_ref, w1_ref, c1_ref, w2_ref, c2_ref, fw_ref, fb_ref,
               g_ref, b_ref, o_ref):
        e = e_ref[...]
        h = jnp.maximum(jnp.dot(e, w1_ref[...], preferred_element_type=jnp.float32)
                        + c1_ref[...], 0.0)
        h = jnp.maximum(jnp.dot(h, w2_ref[...], preferred_element_type=jnp.float32)
                        + c2_ref[...], 0.0)
        x = jnp.dot(h + e, fw_ref[...], preferred_element_type=jnp.float32) + fb_ref[...]
        o_ref[...] = _ln(x, g_ref[...], b_ref[...]).astype(o_ref.dtype)

    row = lambda i: (i, 0)
    full = lambda i: (0, 0)
    return pl.pallas_call(
        kernel,
        out_shape=jax.ShapeDtypeStruct((M, Dz), jnp.float32),
        grid=(pl.cdiv(M, TM),),
        in_specs=[
            pl.BlockSpec((TM, Hd), row),
            pl.BlockSpec((Hd, Hd), full), pl.BlockSpec((1, Hd), full),
            pl.BlockSpec((Hd, Hd), full), pl.BlockSpec((1, Hd), full),
            pl.BlockSpec((Hd, Dz), full), pl.BlockSpec((1, Dz), full),
            pl.BlockSpec((1, Dz), full), pl.BlockSpec((1, Dz), full),
        ],
        out_specs=pl.BlockSpec((TM, Dz), row),
        compiler_params=pltpu.CompilerParams(dimension_semantics=("parallel",)),
    )


# ----------------------------------------------------------------------------
# IPA attention core, tiled over (batch, query tile).
#   lhs = [q*qk_scale | q_pts*sqrt(w_h) | 1]        (per head, lane-contiguous)
#   rhs = [k          | k_pts*sqrt(w_h) | -0.5*||k_pts*sqrt(w_h)||^2]
#   logits_h = lhs_h @ rhs_h^T + b_scale*pair_bias_h + mask_bias   -> softmax
#   o = a@v,  o_pt(global) = a@v_pts,  o_pair[q] = a[q,:] @ z[q]
# ----------------------------------------------------------------------------
def _choose_tq(N, Cz, cap):
    cap = min(cap, N)
    budget = 6 * 1024 * 1024          # bytes for one z block (f32)
    best = None
    c = 8
    while c <= cap:
        if N % c == 0 and c * N * Cz * 4 <= budget:
            best = c
        c += 8
    return best if best is not None else N


@functools.lru_cache(maxsize=None)
def _ipa_attn_call(B, N, H, C, Dk, Dv, Cz, TQ):
    def kernel(lhs_ref, rhs_ref, v_ref, vp_ref, bias_ref, mq_ref, mk_ref, z_ref,
               o_ref, opt_ref, opair_ref):
        mask_bias = _INF * (mq_ref[0] * mk_ref[0] - 1.0)          # [TQ, N]
        lhs = lhs_ref[0]                                          # [TQ, H*Dk]
        rhs = rhs_ref[0]                                          # [N , H*Dk]
        v_all = v_ref[0]                                          # [N , H*C]
        vp_all = vp_ref[0]                                        # [N , H*Dv]
        z_tile = z_ref[0]                                         # [TQ, N, Cz]
        o_parts, opt_parts, opair_parts = [], [], []
        for h in range(H):                                        # static, H is small
            lh = lhs[:, h * Dk:(h + 1) * Dk]
            rh = rhs[:, h * Dk:(h + 1) * Dk]
            logits = jax.lax.dot_general(
                lh, rh, (((1,), (1,)), ((), ())),
                preferred_element_type=jnp.float32)               # [TQ, N]
            logits = logits + bias_ref[0, h] + mask_bias
            m = jnp.max(logits, axis=-1, keepdims=True)
            ex = jnp.exp(logits - m)
            a = ex * pl.reciprocal(jnp.sum(ex, axis=-1, keepdims=True), approx=True)
            o_parts.append(jax.lax.dot_general(
                a, v_all[:, h * C:(h + 1) * C], (((1,), (0,)), ((), ())),
                preferred_element_type=jnp.float32))
            opt_parts.append(jax.lax.dot_general(
                a, vp_all[:, h * Dv:(h + 1) * Dv], (((1,), (0,)), ((), ())),
                preferred_element_type=jnp.float32))
            # o_pair: batched over query rows (batch dim = q), keeps the MXU fed and
            # avoids holding all head maps live.
            op = jax.lax.dot_general(
                a[:, None, :], z_tile, (((2,), (1,)), ((0,), (0,))),
                preferred_element_type=jnp.float32)               # [TQ, 1, Cz]
            opair_parts.append(op[:, 0, :])
        # single lane-dense store per output
        o_ref[0] = jnp.concatenate(o_parts, axis=-1).astype(o_ref.dtype)
        opt_ref[0] = jnp.concatenate(opt_parts, axis=-1).astype(opt_ref.dtype)
        opair_ref[0] = jnp.concatenate(opair_parts, axis=-1).astype(opair_ref.dtype)

    return pl.pallas_call(
        kernel,
        out_shape=(jax.ShapeDtypeStruct((B, N, H * C), jnp.float32),
                   jax.ShapeDtypeStruct((B, N, H * Dv), jnp.float32),
                   jax.ShapeDtypeStruct((B, N, H * Cz), jnp.float32)),
        grid=(B, N // TQ),
        in_specs=[
            pl.BlockSpec((1, TQ, H * Dk), lambda b, q: (b, q, 0)),
            pl.BlockSpec((1, N, H * Dk), lambda b, q: (b, 0, 0)),   # resident per batch
            pl.BlockSpec((1, N, H * C), lambda b, q: (b, 0, 0)),    # resident per batch
            pl.BlockSpec((1, N, H * Dv), lambda b, q: (b, 0, 0)),   # resident per batch
            pl.BlockSpec((1, H, TQ, N), lambda b, q: (b, 0, q, 0)),
            pl.BlockSpec((1, TQ, 1), lambda b, q: (b, q, 0)),
            pl.BlockSpec((1, 1, N), lambda b, q: (b, 0, 0)),
            pl.BlockSpec((1, TQ, N, Cz), lambda b, q: (b, q, 0, 0)),
        ],
        out_specs=(pl.BlockSpec((1, TQ, H * C), lambda b, q: (b, q, 0)),
                   pl.BlockSpec((1, TQ, H * Dv), lambda b, q: (b, q, 0)),
                   pl.BlockSpec((1, TQ, H * Cz), lambda b, q: (b, q, 0))),
        compiler_params=pltpu.CompilerParams(
            dimension_semantics=("parallel", "parallel"),
            vmem_limit_bytes=48 * 1024 * 1024),
    )


# ----------------------------------------------------------------------------
# Rigid-frame helpers (tiny 3x3 per-residue math, kept as JAX glue)
# ----------------------------------------------------------------------------
def frame_apply(R, t, pts):
    return jnp.einsum("bnij,bnpj->bnpi", R, pts) + t[:, :, None, :]


def frame_invert_apply(R, t, pts):
    return jnp.einsum("bnji,bnpj->bnpi", R, pts - t[:, :, None, :])


def quat_to_rotmat(q):
    q = q / jnp.linalg.norm(q, axis=-1, keepdims=True)
    w, x, y, z = q[..., 0], q[..., 1], q[..., 2], q[..., 3]
    return jnp.stack([
        jnp.stack([1 - 2 * (y * y + z * z), 2 * (x * y - w * z), 2 * (x * z + w * y)], -1),
        jnp.stack([2 * (x * y + w * z), 1 - 2 * (x * x + z * z), 2 * (y * z - w * x)], -1),
        jnp.stack([2 * (x * z - w * y), 2 * (y * z + w * x), 1 - 2 * (x * x + y * y)], -1),
    ], axis=-2)


# ----------------------------------------------------------------------------
# InvariantPointAttention forward (OpenFold semantics)
# ----------------------------------------------------------------------------
def ipa_module_forward(p, cfg, s, z, R, t, mask):
    B, N, _ = s.shape
    H, C = cfg["heads"], cfg["c_hidden"]
    Pq, Pv = cfg["qk_points"], cfg["v_points"]
    Cz = z.shape[-1]
    Dq, Dv = 3 * Pq, 3 * Pv
    Dk = C + Dq + 1
    eps = 1e-8

    # one fused projection of s -> [q | kv | q_pts | kv_pts]
    w_cat = jnp.concatenate([p["q_w"], p["kv_w"], p["qp_w"], p["kvp_w"]], axis=1)
    b_cat = jnp.concatenate([p["q_b"], p["kv_b"], p["qp_b"], p["kvp_b"]], axis=0)
    proj = pallas_linear(s, w_cat, b_cat)
    i0 = H * C
    i1 = i0 + 2 * H * C
    i2 = i1 + H * Pq * 3
    q = proj[..., :i0].reshape(B, N, H, C)
    kv = proj[..., i0:i1].reshape(B, N, H, 2 * C)
    k, v = kv[..., :C], kv[..., C:]
    qp_flat = proj[..., i1:i2]
    kvp_flat = proj[..., i2:]

    def to_points(flat, n_pts):
        pts = jnp.stack(jnp.split(flat, 3, axis=-1), axis=-1)      # [B,N,H*P,3]
        pts = frame_apply(R, t, pts)                               # global frame
        return pts.reshape(B, N, H, n_pts, 3)

    q_pts = to_points(qp_flat, Pq)
    kv_pts = to_points(kvp_flat, Pq + Pv)
    k_pts, v_pts = kv_pts[..., :Pq, :], kv_pts[..., Pq:, :]

    # fold softplus(head_weights)*coeff into the qk points as sqrt(w)
    pt_w = jax.nn.softplus(p["head_w"]) * math.sqrt(1.0 / (3.0 * (Pq * 9.0 / 2.0)))
    sqrt_w = jnp.sqrt(pt_w)[None, None, :, None, None]
    qp_s = (q_pts * sqrt_w).reshape(B, N, H, Dq)
    kp_s = (k_pts * sqrt_w).reshape(B, N, H, Dq)
    k_sq = -0.5 * jnp.sum(kp_s * kp_s, axis=-1, keepdims=True)     # [B,N,H,1]

    qk_scale = math.sqrt(1.0 / (3.0 * C))
    ones = jnp.ones((B, N, H, 1), jnp.float32)
    lhs_cat = jnp.concatenate([q * qk_scale, qp_s, ones], axis=-1).reshape(B, N, H * Dk)
    rhs_cat = jnp.concatenate([k, kp_s, k_sq], axis=-1).reshape(B, N, H * Dk)
    v_flat = v.reshape(B, N, H * C)
    vp_flat = v_pts.reshape(B, N, H * Dv)

    # pair bias, pre-scaled by sqrt(1/3), head-major for the attention kernel
    b_scale = math.sqrt(1.0 / 3.0)
    bias = pallas_linear(z, p["b_w"] * b_scale, p["b_b"] * b_scale)  # [B,N,N,H]
    bias_h = jnp.transpose(bias, (0, 3, 1, 2))                       # [B,H,N,N]

    mask_q = mask.reshape(B, N, 1).astype(jnp.float32)
    mask_k = mask.reshape(B, 1, N).astype(jnp.float32)

    TQ = _choose_tq(N, Cz, TILES["attn_tq_cap"])
    o, o_pt_flat, o_pair = _ipa_attn_call(B, N, H, C, Dk, Dv, Cz, TQ)(
        lhs_cat, rhs_cat, v_flat, vp_flat, bias_h, mask_q, mask_k, z)

    o_pt = frame_invert_apply(R, t, o_pt_flat.reshape(B, N, H * Pv, 3))  # local frame
    o_pt_norm = jnp.sqrt(jnp.sum(o_pt * o_pt, axis=-1) + eps)            # [B,N,H*Pv]

    cat = jnp.concatenate(
        [o, o_pt[..., 0], o_pt[..., 1], o_pt[..., 2], o_pt_norm, o_pair], axis=-1)
    return pallas_linear(cat, p["out_w"], p["out_b"])


# ----------------------------------------------------------------------------
# Node transition / EdgeTransition / full IPANetModel forward
# ----------------------------------------------------------------------------
def node_update_forward(p, s, ipa_out):
    B, N, D = s.shape
    tr = p["trans"]
    Hd = p["pre_w"].shape[1]
    M = B * N
    TM = _row_tile(M, TILES["node_tm"])
    out = _node_block_call(M, D, Hd, TM)(
        s.reshape(M, D), ipa_out.reshape(M, D),
        p["ln_g"].reshape(1, D), p["ln_b"].reshape(1, D),
        p["pre_w"], p["pre_b"].reshape(1, Hd),
        tr["w1"], tr["b1"].reshape(1, Hd),
        tr["w2"], tr["b2"].reshape(1, Hd),
        tr["w3"], tr["b3"].reshape(1, Hd),
        tr["ln_g"].reshape(1, Hd), tr["ln_b"].reshape(1, Hd),
        p["post_w"], p["post_b"].reshape(1, D))
    return out.reshape(B, N, D)


def edge_transition_forward(p, s, z):
    B, N, _ = s.shape
    Cz = z.shape[-1]
    node = pallas_linear(s, p["init_w"], p["init_b"])               # [B,N,dim//2]
    hb = node.shape[-1]
    edge_bias = jnp.concatenate([
        jnp.broadcast_to(node[:, :, None, :], (B, N, N, hb)),
        jnp.broadcast_to(node[:, None, :, :], (B, N, N, hb)),
    ], axis=-1)
    e = jnp.concatenate([z, edge_bias], axis=-1)                    # [B,N,N,hidden]
    Hd = e.shape[-1]
    e2 = e.reshape(-1, Hd)
    M = e2.shape[0]
    TM = _row_tile(M, TILES["edge_tm"])
    out = _edge_trunk_call(M, Hd, Cz, TM)(
        e2,
        p["t1_w"], p["t1_b"].reshape(1, Hd),
        p["t2_w"], p["t2_b"].reshape(1, Hd),
        p["fin_w"], p["fin_b"].reshape(1, Cz),
        p["ln_g"].reshape(1, Cz), p["ln_b"].reshape(1, Cz))
    return out.reshape(B, N, N, Cz)


def ipa_net_forward(params, cfg, s, z, R, t, seq_mask, attn_drop_rate=0.0):
    # TODO(synk): nn.Dropout / attention dropout follow eval-mode identity semantics
    # (attn_drop_rate accepted for signature parity but not applied).
    del attn_drop_rate
    for p in params:
        ipa_out = ipa_module_forward(p["ipa"], cfg, s, z, R, t, seq_mask)
        s = node_update_forward(p, s, ipa_out)
        if p["edge"] is not None:
            z = edge_transition_forward(p["edge"], s, z)
    return s


# ----------------------------------------------------------------------------
# Deterministic parameter init
# ----------------------------------------------------------------------------
def _linear_params(key, fan_in, fan_out):
    kw, kb = jax.random.split(key)
    w = 0.02 * jax.random.normal(kw, (fan_in, fan_out), jnp.float32)
    b = 0.02 * jax.random.normal(kb, (fan_out,), jnp.float32)
    return w, b


def init_params(key, cfg):
    dim, pair, H = cfg["dim"], cfg["pair"], cfg["heads"]
    C, Pq, Pv = cfg["c_hidden"], cfg["qk_points"], cfg["v_points"]
    params = []
    for i in range(cfg["depth"]):
        key, *ks = jax.random.split(key, 20)
        ipa = {}
        ipa["q_w"], ipa["q_b"] = _linear_params(ks[0], dim, H * C)
        ipa["kv_w"], ipa["kv_b"] = _linear_params(ks[1], dim, 2 * H * C)
        ipa["qp_w"], ipa["qp_b"] = _linear_params(ks[2], dim, H * Pq * 3)
        ipa["kvp_w"], ipa["kvp_b"] = _linear_params(ks[3], dim, H * (Pq + Pv) * 3)
        ipa["b_w"], ipa["b_b"] = _linear_params(ks[4], pair, H)
        ipa["head_w"] = jnp.full((H,), 0.5, jnp.float32)
        ipa["out_w"], ipa["out_b"] = _linear_params(ks[5], H * (C + pair + Pv * 4), dim)
        layer = {"ipa": ipa,
                 "ln_g": jnp.ones((dim,), jnp.float32),
                 "ln_b": jnp.zeros((dim,), jnp.float32)}
        layer["pre_w"], layer["pre_b"] = _linear_params(ks[6], dim, dim * 4)
        tr = {}
        tr["w1"], tr["b1"] = _linear_params(ks[7], dim * 4, dim * 4)
        tr["w2"], tr["b2"] = _linear_params(ks[8], dim * 4, dim * 4)
        tr["w3"], tr["b3"] = _linear_params(ks[9], dim * 4, dim * 4)
        tr["ln_g"] = jnp.ones((dim * 4,), jnp.float32)
        tr["ln_b"] = jnp.zeros((dim * 4,), jnp.float32)
        layer["trans"] = tr
        layer["post_w"], layer["post_b"] = _linear_params(ks[10], dim * 4, dim)
        if i == cfg["depth"] - 1:
            layer["edge"] = None
        else:
            half = dim // 2
            hidden = 2 * half + pair
            ed = {}
            ed["init_w"], ed["init_b"] = _linear_params(ks[11], dim, half)
            ed["t1_w"], ed["t1_b"] = _linear_params(ks[12], hidden, hidden)
            ed["t2_w"], ed["t2_b"] = _linear_params(ks[13], hidden, hidden)
            ed["fin_w"], ed["fin_b"] = _linear_params(ks[14], hidden, pair)
            ed["ln_g"] = jnp.ones((pair,), jnp.float32)
            ed["ln_b"] = jnp.zeros((pair,), jnp.float32)
            layer["edge"] = ed
        params.append(layer)
    return params


if __name__ == "__main__":
    cfg = dict(dim=32, pair=16, heads=4, depth=2, qk_points=4, v_points=8)
    cfg["c_hidden"] = cfg["dim"] // cfg["heads"]
    B, N = 2, 16

    # shrink tile caps so the multi-block grid paths are exercised at toy sizes
    TILES["linear_tm"] = 8
    TILES["node_tm"] = 8
    TILES["edge_tm"] = 64
    TILES["attn_tq_cap"] = 8

    key = jax.random.PRNGKey(0)
    k_s, k_z, k_q, k_t, k_p = jax.random.split(key, 5)
    s = jax.random.normal(k_s, (B, N, cfg["dim"]), jnp.float32)
    z = jax.random.normal(k_z, (B, N, N, cfg["pair"]), jnp.float32)
    R = quat_to_rotmat(jax.random.normal(k_q, (B, N, 4), jnp.float32))
    t = jax.random.normal(k_t, (B, N, 3), jnp.float32)
    seq_mask = jnp.broadcast_to((jnp.arange(N) < N - 2).astype(jnp.float32), (B, N))

    params = init_params(k_p, cfg)
    out = ipa_net_forward(params, cfg, s, z, R, t, seq_mask, attn_drop_rate=0.0)
    out = jax.block_until_ready(out)
    assert out.shape == (B, N, cfg["dim"])
    assert bool(jnp.all(jnp.isfinite(out)))
    print("KERNEL_OK")
</pallas_src>

<mosaic_0001>
module attributes {stable_mosaic.version = 11 : i64} {
  func.func @kernel(%arg0: i32, %arg1: memref<8x32xf32, #tpu.memory_space<vmem>>, %arg2: memref<32x288xf32, #tpu.memory_space<vmem>>, %arg3: memref<1x288xf32, #tpu.memory_space<vmem>>, %arg4: memref<8x288xf32, #tpu.memory_space<vmem>>) attributes {dimension_semantics = [#tpu.dimension_semantics<parallel>], iteration_bounds = array<i64: 4>, scalar_prefetch = 0 : i64, scratch_operands = 0 : i64, tpu.core_type = #tpu.core_type<tc>, window_params = [{transform_indices = @transform_0, window_bounds = array<i64: 8, 32>}, {pipeline_mode = #tpu.pipeline_mode<synchronous>, transform_indices = @transform_1, window_bounds = array<i64: 32, 288>}, {pipeline_mode = #tpu.pipeline_mode<synchronous>, transform_indices = @transform_2, window_bounds = array<i64: 1, 288>}, {transform_indices = @transform_3, window_bounds = array<i64: 8, 288>}]} {
    %c0 = arith.constant 0 : index
    %c0_0 = arith.constant 0 : index
    %0 = vector.load %arg1[%c0, %c0_0] : memref<8x32xf32, #tpu.memory_space<vmem>>, vector<8x32xf32>
    %c0_1 = arith.constant 0 : index
    %c0_2 = arith.constant 0 : index
    %1 = vector.load %arg2[%c0_1, %c0_2] : memref<32x288xf32, #tpu.memory_space<vmem>>, vector<32x288xf32>
    %cst = arith.constant dense<0.000000e+00> : vector<8x288xf32>
    %2 = tpu.matmul %0, %1, %cst {dimension_numbers = #tpu.dot_dimension_numbers<[1], [0], [0], [1], [0, 0, 1, 1], [], []>} : vector<8x32xf32>, vector<32x288xf32>, vector<8x288xf32> -> vector<8x288xf32>
    %c0_3 = arith.constant 0 : index
    %c0_4 = arith.constant 0 : index
    %3 = vector.load %arg3[%c0_3, %c0_4] : memref<1x288xf32, #tpu.memory_space<vmem>>, vector<1x288xf32>
    %4 = vector.broadcast %3 : vector<1x288xf32> to vector<8x288xf32>
    %5 = arith.addf %2, %4 : vector<8x288xf32>
    %c0_5 = arith.constant 0 : index
    %c0_6 = arith.constant 0 : index
    %6 = vector.load %arg4[%c0_5, %c0_6] : memref<8x288xf32, #tpu.memory_space<vmem>>, vector<8x288xf32>
    tpu.vector_store %arg4[%c0_5, %c0_6], %5 {strides = array<i32>} : memref<8x288xf32, #tpu.memory_space<vmem>>, vector<8x288xf32>,
    return
  }
  func.func @transform_0(%arg0: i32) -> (i32, i32) {
    %c0_i32 = arith.constant 0 : i32
    %c0_i32_0 = arith.constant 0 : i32
    return %arg0, %c0_i32 : i32, i32
  }
  func.func @transform_1(%arg0: i32) -> (i32, i32) {
    %c0_i32 = arith.constant 0 : i32
    %c0_i32_0 = arith.constant 0 : i32
    %c0_i32_1 = arith.constant 0 : i32
    return %c0_i32, %c0_i32_0 : i32, i32
  }
  func.func @transform_2(%arg0: i32) -> (i32, i32) {
    %c0_i32 = arith.constant 0 : i32
    %c0_i32_0 = arith.constant 0 : i32
    %c0_i32_1 = arith.constant 0 : i32
    return %c0_i32, %c0_i32_0 : i32, i32
  }
  func.func @transform_3(%arg0: i32) -> (i32, i32) {
    %c0_i32 = arith.constant 0 : i32
    %c0_i32_0 = arith.constant 0 : i32
    return %arg0, %c0_i32 : i32, i32
  }
}

</mosaic_0001>

<bundles_post_ra>
// kernel: tpu_custom_call.1
= control target key start
LH: loop header
LB: loop body
LE: loop exit
PB: predicated region body
PF: predicated region fallthrough
CT: control target
= control target key end

     0   :  { %8 = vsyncpa [#allocation3], 0  ;;  %s937_s0 = inlined_call_operand.hbm [shape: f32[32,32], index: 0, kind: input, shape index: {}]   ;;  %s938_s1 = inlined_call_operand.hbm [shape: f32[32,288], index: 1, kind: input, shape index: {}]   ;;  %s939_s2 = inlined_call_operand.vmem [shape: f32[1,288], index: 2, kind: input, shape index: {}]   ;;  %s940_s3 = inlined_call_operand.hbm [shape: f32[32,288], index: 3, kind: output, shape index: {}]  }
   0x1   :  { %10 = vsyncpa [#allocation3 + $0x1], 0 }
   0x2   :  { %11 = vsyncpa [#allocation6], 0 }
   0x3   :  { %12 = vsyncpa [#allocation4], 0 }
   0x4   :  { %14 = vsyncpa [#allocation4 + $0x1], 0  ;;  %s740_s12 = smov 0   ;;  %s742_s13 = smov 0  }
   0x5   :  { %s744_s14 = smov 0   ;;  %s746_s15 = smov 0  }
   0x6 LB: > { %s761_s16 = sadd.s32 4294967295, %s710_s15   ;;  %s474_s17 = sadd.s32 4294967294, %s710_s15   ;;  %s710_s15 = sphi %s746_s15, %s959_s15   ;;  %s706_s14 = sphi %s744_s14, %s958_s14   ;;  %s702_s13 = sphi %s742_s13, %s957_s13   ;;  %s698_s12 = sphi %s740_s12, %s956_s12  }
   0x7   : > { %p40_p0 = scmp.ne.s32.totalorder %s702_s13, %s698_s12  ;;  %p941_p1 = scmp.eq.s32.totalorder %s761_s16, 0 }
   0x8   : > { %p112_p3 = scmp.eq.s32.totalorder %s474_s17, 3  ;;  %p475_p5 = scmp.ge.s32.totalorder %s710_s15, 1 }
   0x9   : > { %p770_p4 = por %p941_p1, %p40_p0  ;;  %p119_p7 = scmp.lt.s32.totalorder %s710_s15, 5 }
   0xa   : > { %p775_p6 = por %p112_p3, %p40_p0  ;;  %s712_s21 = smov [#allocation5]  }
   0xb   : > { %s944_s18 = scalar_select %p770_p4, 1, 0 }
   0xc   : > { %s945_s19 = scalar_select %p775_p6, 1, 0 }
   0xd   : > { %p780_p8 = pnand %p475_p5, %p119_p7  ;;  %s131_s22 = sshll.u32 %s712_s21, 4  ;;  %s132_s22 = int_to_ptr.vmem [resolvable:$true] %s131_s22 }
   0xe   : > { %s793_s24 = sadd.s32 1, %s710_s15   ;;  %s27_s25 = sadd.s32 1, %s706_s14 }
   0xf   : > { %s946_s20 = scalar_select %p780_p8, 1, 0 }
  0x10   : > { %p528_p9 = pneg %p780_p8  ;;  %s24_s26 = ssub.s32 %s710_s15, %s793_s24 }
  0x11   : > { %s582_s29 = scalar_lea.hbm %s938_s1, 1536 }
  0x12   : > { %p788_p10 = pnand %p528_p9, %p941_p1  ;;  %p583_p11 = scmp.ne.s32.totalorder %s938_s1, %s582_s29 }
  0x13   : > { %p589_p3 = scmp.lt.u32.totalorder %s582_s29, %s938_s1 }
  0x14   : > { %p584_p12 = pneg %p788_p10 }
  0x16   : > { %p585_p13 = pnand %p584_p12, %p583_p11 }
  0x18   : > { %p586_p0 = pneg %p585_p13 }
  0x1a   : > { %p591_p5 = pnand %p589_p3, %p586_p0 }
  0x1c   : > { %594 = shalt.err (!%p591_p5)
}
  0x1d   : > { %s595_s7 = scalar_lea.vmem %s132_s22, 1536  ;;  %p603_p2 = scmp.lt.s32.totalorder %s132_s22, %s132_s22 }
  0x1e   : > { %p596_p7 = scmp.ne.s32.totalorder %s132_s22, %s595_s7  ;;  %p604_p6 = scmp.lt.s32.totalorder %s595_s7, %s595_s7 }
  0x20   : > { %p598_p9 = pnand %p596_p7, %p584_p12  ;;  %p605_p4 = por %p604_p6, %p603_p2 }
  0x22   : > { %p599_p1 = pneg %p598_p9 }
  0x24   : > { %p606_p8 = pnand %p605_p4, %p599_p1 }
  0x26   : > { %609 = shalt.err (!%p606_p8)
}
  0x27   : > { %s713_s8 = smov 384   ;;  %s714_s9 = smov 24  }
  0x28   : > { %531 = dma.hbm_to_vmem [thread:$0]  (!%p788_p10), %s938_s1, 1536, %s132_s22, [#allocation6], %s713_s8, %s713_s8, %s714_s9  }
  0x29   : > { %p25_p11 = scmp.eq.s32.totalorder %s24_s26, 0  ;;  %p34_p2 = scmp.ne.s32.totalorder %s706_s14, %s702_s13 }
  0x2a   : > { %p35_p1 = scmp.eq.s32.totalorder %s710_s15, 0  ;;  %p541_p4 = scmp.lt.s32.totalorder %s710_s15, 4 }
  0x2b   : > { %s819_s17 = scalar_select %p25_p11, %s706_s14, %s27_s25  }
  0x2c   : > { %p36_p6 = por %p35_p1, %p34_p2  ;;  %p948_p8 = scmp.eq.s32.totalorder %s761_s16, 3 }
  0x2d   : > { %s148_s27 = sand.u32 1, %s706_s14   ;;  %s479_s28 = sshll.u32 %s710_s15, 7 }
  0x2e   : > { %p823_p12 = por %p948_p8, %p34_p2  ;;  %s478_s29 = sshll.u32 %s148_s27, 3 }
  0x2f   : > { %s832_s4 = scalar_lea.hbm %s937_s0, %s479_s28  ;;  %s152_s22 = scalar_lea.vmem [#allocation2], %s478_s29 }
  0x30   : > { %s159_s25 = sshll.u32 %s152_s22, 4  ;;  %p834_p10 = pnand %p541_p4, %p36_p6  ;;  %s838_s25 = int_to_ptr.vmem [resolvable:$true] %s159_s25 }
  0x31   : > { %s149_s5 = scalar_lea.sflag [#allocation3], %s148_s27  ;;  %s610_s6 = scalar_lea.hbm %s832_s4, 128 }
  0x32   : > { %p611_p13 = scmp.ne.s32.totalorder %s832_s4, %s610_s6  ;;  %p612_p0 = pneg %p834_p10 }
  0x33   : > { %s615_s9 = scalar_lea.hbm %s937_s0, 512  ;;  %p616_p7 = scmp.lt.u32.totalorder %s832_s4, %s937_s0 }
  0x34   : > { %p613_p3 = pnand %p612_p0, %p611_p13  ;;  %p617_p9 = scmp.lt.u32.totalorder %s615_s9, %s610_s6 }
  0x35   : > { %p619_p2 = scmp.lt.u32.totalorder %s610_s6, %s832_s4 }
  0x36   : > { %p614_p5 = pneg %p613_p3  ;;  %p618_p11 = por %p617_p9, %p616_p7 }
  0x38   : > { %p620_p1 = por %p619_p2, %p618_p11 }
  0x3a   : > { %p621_p4 = pnand %p620_p1, %p614_p5 }
  0x3c   : > { %624 = shalt.err (!%p621_p4)
}
  0x3d   : > { %s625_s27 = scalar_lea.vmem %s838_s25, 128  ;;  %s715_s28 = smov [#allocation2]  }
  0x3e   : > { %p626_p6 = scmp.ne.s32.totalorder %s838_s25, %s625_s27  ;;  %s630_s29 = sshll.u32 %s715_s28, 4  ;;  %s631_s29 = int_to_ptr.vmem [resolvable:$false] %s630_s29 }
  0x3f   : > { %s632_s23 = scalar_lea.vmem %s631_s29, 256  ;;  %p633_p3 = scmp.lt.s32.totalorder %s838_s25, %s631_s29 }
  0x40   : > { %p628_p8 = pnand %p626_p6, %p612_p0  ;;  %p634_p7 = scmp.lt.s32.totalorder %s632_s23, %s625_s27 }
  0x42   : > { %p629_p13 = pneg %p628_p8  ;;  %p635_p9 = por %p634_p7, %p633_p3 }
  0x44   : > { %p636_p11 = pnand %p635_p9, %p629_p13 }
  0x46   : > { %639 = shalt.err (!%p636_p11)
}
  0x47   : > { %535 = dma.hbm_to_vmem [thread:$0]  (!%p834_p10), %s832_s4, 128, %s838_s25, %s149_s5  }
  0x48   : > { %p951_p5 = scmp.ne.s32.totalorder %s946_s20, 0 }
  0x49   : > { %s868_s30 = sand.u32 (!%p951_p5), 1, %s702_s13   ;;  %p952_p0 = scmp.ne.s32.totalorder (!%p951_p5), %s944_s18, 0 }
  0x4a   : > { %168 = sbr.rel (%p951_p5) target bundleno = 325 (0x145), region = 32  ;;  %s481_s22 = sshll.u32 (!%p951_p5), %s868_s30, 3 }
  0x4b   : > { %s171_s6 = scalar_lea.sflag (!%p951_p5), [#allocation3], %s868_s30  ;;  %s872_s7 = scalar_lea.vmem (!%p951_p5), [#allocation2], %s481_s22 }
  0x51   : > { %685 = dma.done.wait (%p952_p0), %s171_s6, 128  }
  0x52   : > { %687 = vsyncadd (%p952_p0), %s171_s6, 4294967168  ;;  %p953_p10 = scmp.eq.s32.totalorder %s761_s16, 0 }
  0x54   : > { %689 = dma.done.wait (%p953_p10), [#allocation6], 1536   ;;  %p954_p2 = pmov %p953_p10 }
  0x55   : > { %v716_v0 = vmov 0.0|0.0   ;;  %v717_v1 = vmov 0.0   ;;  %vm718_vm0 = vmmov 0   ;;  %v203_v2 = vld [vmem:[#allocation5 + $0x8] sm:$0xff]  ;;  %v206_v3 = vld [vmem:[#allocation5 + $0x20] sm:$0xff]  ;;  %v205_v6 = vld [vmem:[#allocation5 + $0x18] sm:$0xff]  ;;  %v216_v21 = vlaneseq }
  0x56   : > { %691 = vsyncadd (%p954_p2), [#allocation6], 4294965760  ;;  %512 = vmatprep.subr.bf16.mxu1 %v716_v0  ;;  %299 = vmatprep.mubr.f32.mxu0 %v717_v1  ;;  %v202_v4 = vld [vmem:[#allocation5] sm:$0xff]  ;;  %v504_v5 = vpack.c.bf16 %v206_v3, %v203_v2  ;;  %v204_v7 = vld [vmem:[#allocation5 + $0x10] sm:$0xff]  ;;  %vm231_vm1 = vcmask 261120   ;;  %s518_s18 = smul.u32 24, %s868_s30 }
  0x57   : > { %501 = vmatprep.mubr.msk.f32.mxu1 %vm718_vm0, %v717_v1  ;;  %v207_v8 = vld [vmem:[#allocation5 + $0x28] sm:$0xff]  ;;  %v506_v9 = vpack.c.bf16 %v205_v6, %v202_v4  ;;  %v209_v11 = vld [vmem:[#allocation5 + $0x38] sm:$0xff]  ;;  %v212_v12 = vld [vmem:[#allocation5 + $0x50] sm:$0xff]  ;;  %v217_v22 = vshrl.u32 %v216_v21, 7  ;;  %s519_s25 = smul.u32 384, %s761_s16  ;;  %s380_s16 = scalar_lea.sflag [#allocation4], %s868_s30 }
  0x58   : > { %v513_v10 = vpack.c.bf16 %v207_v8, %v204_v7  ;;  %v208_v13 = vld [vmem:[#allocation5 + $0x30] sm:$0xff]  ;;  %505 = vmatprep.subr.bf16.mxu0 %v504_v5  ;;  %v508_v14 = vpack.c.bf16 %v212_v12, %v209_v11  ;;  %v211_v15 = vld [vmem:[#allocation5 + $0x48] sm:$0xff]  ;;  %v210_v16 = vld [vmem:[#allocation5 + $0x40] sm:$0xff]  ;;  %s200_s26 = scalar_lea.vmem [#allocation7], %s518_s18  ;;  %s719_s27 = smov [#allocation7]  }
  0x59   : > { %v213_v17 = vld [vmem:[#allocation5 + $0x58] sm:$0xff]  ;;  %507 = vmatpush1.bf16.msra.mxu0 %v506_v9  ;;  %v510_v18 = vpack.c.bf16 %v211_v15, %v208_v13  ;;  %v218_v23 = vsub.s32 0, %v217_v22  ;;  %v226_v24 = vsub.s32 2, %v217_v22  ;;  %v214_v25 = vld [vmem:[%s939_s2] sm:$0x7]  ;;  %v222_v26 = vsub.s32 1, %v217_v22  ;;  %s893_s10 = scalar_lea.hbm %s940_s3, %s519_s25 }
  0x5a   : > { %514 = vmatpush3.bf16.msra.mxu1 %v513_v10  ;;  %v516_v19 = vpack.c.bf16 %v213_v17, %v210_v16  ;;  %509 = vmatprep.subr.bf16.mxu0 %v508_v14  ;;  %v201_v20 = vld [vmem:[%s872_s7] sm:$0xff]  ;;  %s394_s5 = sshll.u32 %s200_s26, 4  ;;  %s644_s28 = sshll.u32 %s719_s27, 4  ;;  %s895_s5 = int_to_ptr.vmem [resolvable:$true] %s394_s5  ;;  %s645_s28 = int_to_ptr.vmem [resolvable:$false] %s644_s28 }
  0x5b   : > { %515 = vmatprep.subr.bf16.mxu1 %v716_v0  ;;  %v219_v27 = vrot.slane %v214_v25, %v218_v23  ;;  %v227_v28 = vrot.slane %v214_v25, %v226_v24  ;;  %v223_v29 = vrot.slane %v214_v25, %v222_v26  ;;  %s640_s11 = scalar_lea.vmem %s895_s5, 384  ;;  %s646_s29 = scalar_lea.vmem %s645_s28, 768 }
  0x5c   : > { %p641_p1 = scmp.ne.s32.totalorder %s895_s5, %s640_s11  ;;  %p647_p8 = scmp.lt.s32.totalorder %s895_s5, %s645_s28 }
  0x5d   : > { %511 = vmatpush1.bf16.msra.mxu0 %v510_v18  ;;  %p648_p13 = scmp.lt.s32.totalorder %s646_s29, %s640_s11 }
  0x5e   : > { %517 = vmatpush3.bf16.msra.mxu1 %v516_v19  ;;  %p642_p4 = pnand %p641_p1, %p823_p12 }
  0x5f   : > { %p649_p3 = por %p648_p13, %p647_p8 }
  0x60   : > { %483 = vmatmul.mubr.msk.f32.vlgmr.msra.gmra.mrb[0].mxu0 %vm231_vm1, %v201_v20  ;;  %p643_p6 = pneg %p642_p4 }
  0x61   : > { %502 = vmatmul.mubr.msk.f32.vlgmr.msra.gmra.mrb[0].mxu1 %vm231_vm1, %v201_v20 }
  0x62   : > { %p650_p7 = pnand %p649_p3, %p643_p6 }
 0x133   : > { %v301_v30 = vpop.f32.mrb[0].mxu0 }
 0x134   : > { %v372_v31 = vpop.f32.mrb[0].mxu1  ;;  %v302_v32 = vadd.f32 %v301_v30, %v219_v27  ;;  %v303_v34 = vpop.f32.mrb[1].mxu0 }
 0x135   : > { %v373_v33 = vadd.f32 %v372_v31, %v227_v28  ;;  %v503_v35 = vpop.f32.mrb[1].mxu1  ;;  %v304_v36 = vadd.f32 %v303_v34, %v223_v29 }
 0x136   : > { %376 = vst [vmem:[%s200_s26] sm:$0xff] %v302_v32 }
 0x137   : > { %378 = vst.msk [vmem:[%s200_s26 + $0x10] sm:$0xff] %vm231_vm1, %v373_v33  ;;  %377 = vst [vmem:[%s200_s26 + $0x8] sm:$0xff] %v304_v36 }
 0x138   : > { %653 = shalt.err (!%p650_p7)
}
 0x139   : > { %s654_s23 = scalar_lea.hbm %s893_s10, 384  ;;  %s658_s6 = scalar_lea.hbm %s940_s3, 1536 }
 0x13a   : > { %p655_p9 = scmp.ne.s32.totalorder %s893_s10, %s654_s23  ;;  %p659_p0 = scmp.lt.u32.totalorder %s893_s10, %s940_s3 }
 0x13b   : > { %p660_p10 = scmp.lt.u32.totalorder %s658_s6, %s654_s23  ;;  %p662_p1 = scmp.lt.u32.totalorder %s654_s23, %s893_s10 }
 0x13c   : > { %p656_p11 = pnand %p655_p9, %p823_p12 }
 0x13d   : > { %p661_p2 = por %p660_p10, %p659_p0 }
 0x13e   : > { %p657_p5 = pneg %p656_p11 }
 0x13f   : > { %p663_p4 = por %p662_p1, %p661_p2 }
 0x141   : > { %p664_p6 = pnand %p663_p4, %p657_p5 }
 0x143   : > { %667 = shalt.err (!%p664_p6)
}
 0x144   : > { %526 = dma.vmem_to_hbm [thread:$0]  (%p823_p12), %s895_s5, 384, %s893_s10, %s380_s16  }
 0x145 PF: > { %p543_p8 = scmp.ge.s32.totalorder %s710_s15, 2  ;;  %s406_s20 = sand.u32 1, %s698_s12  }
 0x146   : > { %p955_p13 = scmp.ne.s32.totalorder %s945_s19, 0  ;;  %s407_s4 = scalar_lea.sflag [#allocation4], %s406_s20 }
 0x148   : > { %p537_p3 = pnand %p543_p8, %p955_p13 }
 0x14a   : > { %693 = dma.done.wait (!%p537_p3), %s407_s4, 384  }
 0x14b   : > { %695 = vsyncadd (!%p537_p3), %s407_s4, 4294966912  ;;  %p17_p7 = scmp.ge.s32.totalorder %s793_s24, 6   ;;  %s956_s12 = smov %s702_s13 }
 0x14c   : > { %s957_s13 = smov %s706_s14  ;;  %s958_s14 = smov %s819_s17 }
 0x14d   : > { %s959_s15 = smov %s793_s24  ;;  %19 = sbr.rel (!%p17_p7) target bundleno = 6 (0x6), region = 81 }
 0x154   :  { %412 = vsyncpa [#allocation3], 1 }
 0x155   :  { %414 = vsyncpa [#allocation3 + $0x1], 1 }
 0x156   :  { %415 = vsyncpa [#allocation6], 1 }
 0x157   :  { %416 = vsyncpa [#allocation4], 1 }
 0x158   :  { %418 = vsyncpa [#allocation4 + $0x1], 1 }

</bundles_post_ra>
